<compile_context>
chip_gen: v7x
topology: tpu7x:2x2x1
jax: 0.10.0
libtpu: 0.0.40
codegen_flags: <defaults>
</compile_context>

<pallas_src>
import math

import jax
import jax.numpy as jnp
from jax.experimental import pallas as pl
from jax.experimental.pallas import tpu as pltpu


def _pick_vmem_limit():
    # Larger scoped-VMEM on v5e/v6e (128 MiB physical); conservative on v7x (64 MiB).
    try:
        cap = pltpu.get_tpu_info().vmem_capacity_bytes
        return int(max(32 * 1024 * 1024, min(3 * cap // 4, 96 * 1024 * 1024)))
    except Exception:
        return 32 * 1024 * 1024


_VMEM_LIMIT = _pick_vmem_limit()


def _row_tile(M, target=512):
    """Row tile: full M for small inputs, else a 512-row (8-multiple) tile."""
    return int(M) if M <= target else int(target)


# ----------------------------- Linear (bf16 MXU matmul + f32 bias) -----------------------------

def _linear_kernel(x_ref, w_ref, b_ref, o_ref):
    o_ref[...] = (jnp.dot(x_ref[...], w_ref[...], preferred_element_type=jnp.float32)
                  + b_ref[...]).astype(o_ref.dtype)


def linear(x2d, w, b, out_dtype=jnp.float32):
    """x2d: (M, K) (cast to bf16 pre-DMA), w: (K, N), b: (N,)."""
    M, K = x2d.shape
    N = w.shape[1]
    tm = _row_tile(M)
    return pl.pallas_call(
        _linear_kernel,
        out_shape=jax.ShapeDtypeStruct((M, N), out_dtype),
        grid=(pl.cdiv(M, tm),),
        in_specs=[
            pl.BlockSpec((tm, K), lambda i: (i, 0)),
            pl.BlockSpec((K, N), lambda i: (0, 0)),
            pl.BlockSpec((1, N), lambda i: (0, 0)),
        ],
        out_specs=pl.BlockSpec((tm, N), lambda i: (i, 0)),
        compiler_params=pltpu.CompilerParams(
            dimension_semantics=("parallel",), vmem_limit_bytes=_VMEM_LIMIT),
    )(x2d.astype(jnp.bfloat16), w.astype(jnp.bfloat16),
      b.reshape(1, N).astype(jnp.float32))


# ----------------------------- Fused LayerNorm + Linear -----------------------------

def _make_ln_linear_kernel(eps):
    def kernel(x_ref, g_ref, bln_ref, w_ref, b_ref, o_ref):
        x = x_ref[...].astype(jnp.float32)
        mu = jnp.mean(x, axis=-1, keepdims=True)
        xc = x - mu
        var = jnp.mean(xc * xc, axis=-1, keepdims=True)
        xn = xc * jax.lax.rsqrt(var + eps) * g_ref[...] + bln_ref[...]
        o_ref[...] = (jnp.dot(xn.astype(jnp.bfloat16), w_ref[...],
                              preferred_element_type=jnp.float32)
                      + b_ref[...]).astype(o_ref.dtype)
    return kernel


def ln_linear(x2d, g, bln, w, b, eps=1e-6, out_dtype=jnp.float32):
    """LayerNorm(x) @ w + b fused in one pass over the activation (x stays f32 for LN)."""
    M, K = x2d.shape
    N = w.shape[1]
    tm = _row_tile(M)
    return pl.pallas_call(
        _make_ln_linear_kernel(eps),
        out_shape=jax.ShapeDtypeStruct((M, N), out_dtype),
        grid=(pl.cdiv(M, tm),),
        in_specs=[
            pl.BlockSpec((tm, K), lambda i: (i, 0)),
            pl.BlockSpec((1, K), lambda i: (0, 0)),
            pl.BlockSpec((1, K), lambda i: (0, 0)),
            pl.BlockSpec((K, N), lambda i: (0, 0)),
            pl.BlockSpec((1, N), lambda i: (0, 0)),
        ],
        out_specs=pl.BlockSpec((tm, N), lambda i: (i, 0)),
        compiler_params=pltpu.CompilerParams(
            dimension_semantics=("parallel",), vmem_limit_bytes=_VMEM_LIMIT),
    )(x2d.astype(jnp.float32), g.reshape(1, K).astype(jnp.float32),
      bln.reshape(1, K).astype(jnp.float32), w.astype(jnp.bfloat16),
      b.reshape(1, N).astype(jnp.float32))


# ----------------------------- Depthwise 3x3 conv (+ fused GELU) -----------------------------

def _make_dwconv_kernel(Hc, Wc, C, apply_gelu):
    inv_sqrt2 = 1.0 / math.sqrt(2.0)

    def kernel(x_ref, w_ref, b_ref, o_ref, xp_ref):
        # 1-px zero halo built in VMEM; only the border is zeroed (interior overwritten).
        xp_ref[1:Hc + 1, 1:Wc + 1, :] = x_ref[...].astype(jnp.float32)
        zrow = jnp.zeros((1, Wc + 2, C), jnp.float32)
        xp_ref[0:1, :, :] = zrow
        xp_ref[Hc + 1:Hc + 2, :, :] = zrow
        zcol = jnp.zeros((Hc + 2, 1, C), jnp.float32)
        xp_ref[:, 0:1, :] = zcol
        xp_ref[:, Wc + 1:Wc + 2, :] = zcol

        w = w_ref[...].astype(jnp.float32)              # (3, 3, C) — hoisted, single load
        acc = jnp.zeros((Hc, Wc, C), jnp.float32)
        for dx in range(3):
            xs = xp_ref[:, dx:dx + Wc, :]               # one sublane shift per dx (3 total)
            for dy in range(3):
                acc = acc + xs[dy:dy + Hc, :, :] * w[dy:dy + 1, dx:dx + 1, :]
        acc = acc + b_ref[...].astype(jnp.float32)
        if apply_gelu:
            # exact GELU (matches torch.nn.GELU default, erf-based)
            acc = 0.5 * acc * (1.0 + jax.lax.erf(acc * inv_sqrt2))
        o_ref[...] = acc.astype(o_ref.dtype)
    return kernel


def dwconv_scale(x_tokens, Hc, Wc, w, b, apply_gelu=True, out_dtype=jnp.bfloat16):
    """Depthwise 3x3 conv (stride 1, pad 1) on tokens of one spatial scale, NHWC."""
    B, N, C = x_tokens.shape
    assert N == Hc * Wc
    x_img = x_tokens.reshape(B, Hc, Wc, C).astype(jnp.float32)
    # TODO(synk): band-tile along H with a 1-row halo (manual DMA) for v7x / large images
    #             instead of one whole image per grid step.
    out = pl.pallas_call(
        _make_dwconv_kernel(Hc, Wc, C, apply_gelu),
        out_shape=jax.ShapeDtypeStruct((B, Hc, Wc, C), out_dtype),
        grid=(B,),
        in_specs=[
            pl.BlockSpec((None, Hc, Wc, C), lambda bb: (bb, 0, 0, 0)),
            pl.BlockSpec((3, 3, C), lambda bb: (0, 0, 0)),
            pl.BlockSpec((1, 1, C), lambda bb: (0, 0, 0)),
        ],
        out_specs=pl.BlockSpec((None, Hc, Wc, C), lambda bb: (bb, 0, 0, 0)),
        scratch_shapes=[pltpu.VMEM((Hc + 2, Wc + 2, C), jnp.float32)],
        compiler_params=pltpu.CompilerParams(
            dimension_semantics=("parallel",), vmem_limit_bytes=_VMEM_LIMIT),
    )(x_img, w.astype(jnp.float32), b.reshape(1, 1, C).astype(jnp.float32))
    return out.reshape(B, Hc * Wc, C)


# ----------------------------- Deformable attention core -----------------------------

def _make_deform_kernel(Qt, Dh, n_heads, P, Hmax, Wmax, L):
    HP = n_heads * P

    def kernel(meta_ref, val_ref, o_ref, acc_ref):
        lvl = pl.program_id(2)

        @pl.when(lvl == 0)
        def _init():
            acc_ref[...] = jnp.zeros_like(acc_ref)

        meta = meta_ref[...].astype(jnp.float32)       # (Qt, 3*HP)
        px = meta[:, 0:HP]                             # pixel-x coords (pre-scaled per level)
        py = meta[:, HP:2 * HP]                        # pixel-y coords
        aw = meta[:, 2 * HP:3 * HP]                    # softmaxed attention weights

        # level-invariant sample coordinates, hoisted out of the head/point loops
        sy = jax.lax.broadcasted_iota(jnp.int32, (1, Hmax), 1).astype(jnp.float32)
        sx = jax.lax.broadcasted_iota(jnp.int32, (1, Wmax), 1).astype(jnp.float32)

        head_outs = []
        for h in range(n_heads):
            v = val_ref[h]                             # (Hmax, Wmax*Dh) bf16, outer-dim slice
            contrib = jnp.zeros((Qt, Dh), jnp.float32)
            for p in range(P):
                c = h * P + p
                # separable bilinear kernel; zero padding handled by zero-padded value.
                ky = jnp.maximum(0.0, 1.0 - jnp.abs(py[:, c:c + 1] - sy))   # (Qt, Hmax)
                kx = jnp.maximum(0.0, 1.0 - jnp.abs(px[:, c:c + 1] - sx))   # (Qt, Wmax)
                kyw = (aw[:, c:c + 1] * ky).astype(jnp.bfloat16)
                # contract over H on the MXU -> (Qt, Wmax*Dh)
                t = jnp.dot(kyw, v, preferred_element_type=jnp.float32)
                # cheap kx-weighted reduce over W
                for x in range(Wmax):
                    contrib = contrib + kx[:, x:x + 1] * t[:, x * Dh:(x + 1) * Dh]
            head_outs.append(contrib)

        # single lane-dense (Qt, C) accumulator update (C = n_heads * Dh)
        acc_ref[...] += jnp.concatenate(head_outs, axis=-1)

        @pl.when(lvl == L - 1)
        def _fin():
            o_ref[...] = acc_ref[...].astype(o_ref.dtype)
    return kernel


def deform_attn_core(value_lvl, meta, n_heads, n_points, Dh):
    """value_lvl: (B, L, heads, Hmax, Wmax*Dh) bf16 zero-padded per level;
       meta: (B, L, Q, 3*heads*P) f32 packed [pixel_x | pixel_y | softmax(attn)]."""
    B, L, nh, Hmax, WD = value_lvl.shape
    assert nh == n_heads
    Wmax = WD // Dh
    Q = meta.shape[2]
    HP = n_heads * n_points
    C = n_heads * Dh
    tq = _row_tile(Q)
    nqt = pl.cdiv(Q, tq)

    flops_per_step = n_heads * n_points * (2 * tq * Hmax * WD + 2 * tq * Wmax * Dh
                                           + 8 * tq * (Hmax + Wmax))
    cost = pl.CostEstimate(
        flops=int(B * nqt * L * flops_per_step),
        transcendentals=0,
        bytes_accessed=int(2 * B * nqt * L * n_heads * Hmax * WD
                           + 4 * B * L * Q * 3 * HP + 4 * B * Q * C))

    kernel = _make_deform_kernel(tq, Dh, n_heads, n_points, Hmax, Wmax, L)
    return pl.pallas_call(
        kernel,
        out_shape=jax.ShapeDtypeStruct((B, Q, C), jnp.float32),
        grid=(B, nqt, L),
        in_specs=[
            pl.BlockSpec((None, None, tq, 3 * HP), lambda b, q, l: (b, l, q, 0)),
            pl.BlockSpec((None, None, n_heads, Hmax, WD), lambda b, q, l: (b, l, 0, 0, 0)),
        ],
        out_specs=pl.BlockSpec((None, tq, C), lambda b, q, l: (b, q, 0)),
        scratch_shapes=[pltpu.VMEM((tq, C), jnp.float32)],
        compiler_params=pltpu.CompilerParams(
            dimension_semantics=("parallel", "parallel", "arbitrary"),
            vmem_limit_bytes=_VMEM_LIMIT),
        cost_estimate=cost,
    )(meta.astype(jnp.float32), value_lvl.astype(jnp.bfloat16))


# ----------------------------- MS-Deformable attention (module-level glue) -----------------------------

def ms_deform_attn(p, query, q_ln, feat, f_ln, reference_points, spatial_shapes,
                   level_start, n_heads, n_points):
    B, Q, C = query.shape
    _, S, _ = feat.shape
    L = len(spatial_shapes)
    P = n_points
    Dh = C // n_heads
    assert sum(h * w for (h, w) in spatial_shapes) == S

    # value projection with feat LayerNorm fused; bf16 output halves deform-core DMA.
    value = ln_linear(feat.reshape(B * S, C), f_ln[0], f_ln[1],
                      p['value_proj_w'], p['value_proj_b'],
                      out_dtype=jnp.bfloat16).reshape(B, S, C)

    # sampling_offsets + attention_weights projections fused (share the same LN'd query).
    n_off = n_heads * L * P * 2
    w_cat = jnp.concatenate([p['sampling_offsets_w'], p['attention_weights_w']], axis=1)
    b_cat = jnp.concatenate([p['sampling_offsets_b'], p['attention_weights_b']], axis=0)
    proj = ln_linear(query.reshape(B * Q, C), q_ln[0], q_ln[1], w_cat, b_cat)
    proj = proj.reshape(B, Q, n_off + n_heads * L * P)
    offs = proj[..., :n_off].reshape(B, Q, n_heads, L, P, 2)
    attn_w = jax.nn.softmax(proj[..., n_off:].reshape(B, Q, n_heads, L * P), axis=-1)
    attn_w = attn_w.reshape(B, Q, n_heads, L, P)

    offset_normalizer = jnp.array([[w, h] for (h, w) in spatial_shapes], jnp.float32)
    # reference_points: (B, Q, 1, 2), last dim = (x, y) normalized
    loc = (reference_points[:, :, None, :, None, :]
           + offs / offset_normalizer[None, None, None, :, None, :])   # (B,Q,H,L,P,2)

    # grid_sample(align_corners=False): pixel = loc * size - 0.5.  Level sizes are static,
    # so scale here — the kernel needs no per-level scalars.
    Wl = jnp.array([w for (_, w) in spatial_shapes], jnp.float32)
    Hl = jnp.array([h for (h, _) in spatial_shapes], jnp.float32)
    px = loc[..., 0] * Wl[None, None, None, :, None] - 0.5
    py = loc[..., 1] * Hl[None, None, None, :, None] - 0.5

    def to_meta(a):   # (B, Q, heads, L, P) -> (B, L, Q, heads*P)
        return jnp.transpose(a, (0, 3, 1, 2, 4)).reshape(B, L, Q, n_heads * P)

    meta = jnp.concatenate([to_meta(px), to_meta(py), to_meta(attn_w)], axis=-1)

    # per-level value: head-major outer dim, natural (Hl, Wl*Dh) layout, zero-padded to
    # the largest level so the level axis can be a grid reduction axis.
    Hmax = max(h for (h, _) in spatial_shapes)
    Wmax = max(w for (_, w) in spatial_shapes)
    v_levels = []
    for l, (h_l, w_l) in enumerate(spatial_shapes):
        st = level_start[l]
        v = value[:, st:st + h_l * w_l, :].reshape(B, h_l, w_l, n_heads, Dh)
        v = jnp.transpose(v, (0, 3, 1, 2, 4)).reshape(B, n_heads, h_l, w_l * Dh)
        v = jnp.pad(v, ((0, 0), (0, 0), (0, Hmax - h_l), (0, (Wmax - w_l) * Dh)))
        v_levels.append(v)
    value_lvl = jnp.stack(v_levels, axis=1)          # (B, L, heads, Hmax, Wmax*Dh)
    # TODO(synk): additionally tile Sl (split Hmax) within a level for very large levels.

    out = deform_attn_core(value_lvl, meta, n_heads, n_points, Dh)
    out = linear(out.reshape(B * Q, C), p['output_proj_w'], p['output_proj_b'])
    return out.reshape(B, Q, C)


# ----------------------------- ConvFFN / Injector / Extractor -----------------------------

def conv_ffn(p, x, ffn_ln, H, W):
    B, N, C = x.shape
    hidden = p['fc1_w'].shape[1]
    h = ln_linear(x.reshape(B * N, C), ffn_ln[0], ffn_ln[1],
                  p['fc1_w'], p['fc1_b']).reshape(B, N, hidden)
    n = N // 21
    # GELU fused into each dwconv kernel (gelu(concat) == concat(gelu)); bf16 outputs
    # feed the fc2 MXU matmul directly.
    x1 = dwconv_scale(h[:, :16 * n], 2 * H, 2 * W, p['dw_w'], p['dw_b'])
    x2 = dwconv_scale(h[:, 16 * n:20 * n], H, W, p['dw_w'], p['dw_b'])
    x3 = dwconv_scale(h[:, 20 * n:], H // 2, W // 2, p['dw_w'], p['dw_b'])
    hc = jnp.concatenate([x1, x2, x3], axis=1)
    # dropout p=0.0 -> identity
    return linear(hc.reshape(B * N, hidden), p['fc2_w'], p['fc2_b']).reshape(B, N, C)


def injector_forward(p, query, reference_points, feat, spatial_shapes, level_start,
                     n_heads, n_points):
    attn = ms_deform_attn(p['attn'], query, (p['query_norm_w'], p['query_norm_b']),
                          feat, (p['feat_norm_w'], p['feat_norm_b']),
                          reference_points, spatial_shapes, level_start,
                          n_heads, n_points)
    return query + p['gamma'][None, None, :] * attn


def extractor_forward(p, query, reference_points, feat, spatial_shapes, level_start,
                      H, W, n_heads, n_points):
    attn = ms_deform_attn(p['attn'], query, (p['query_norm_w'], p['query_norm_b']),
                          feat, (p['feat_norm_w'], p['feat_norm_b']),
                          reference_points, spatial_shapes, level_start,
                          n_heads, n_points)
    query = query + attn
    # drop_path = Identity (drop_path=0.0); ffn_norm fused into fc1 inside conv_ffn
    query = query + conv_ffn(p['ffn'], query, (p['ffn_norm_w'], p['ffn_norm_b']), H, W)
    return query


def interaction_block_with_cls(params, x, c, cls, blocks, deform_inputs1,
                               deform_inputs2, H, W, n_heads, n_points):
    ref1, ss1, lsi1 = deform_inputs1
    ref2, ss2, lsi2 = deform_inputs2
    x = injector_forward(params['injector'], x, ref1, c, ss1, lsi1, n_heads, n_points)
    x = jnp.concatenate([cls, x], axis=1)
    for blk in blocks:   # external ViT blocks; empty in this synthetic test
        x = blk(x, H, W)
    cls, x = x[:, :1], x[:, 1:]
    c = extractor_forward(params['extractor'], c, ref2, x, ss2, lsi2, H, W,
                          n_heads, n_points)
    # extra_extractors is None (extra_extractor=False)
    return x, c, cls


# ----------------------------- parameter / input setup -----------------------------

def get_reference_points(spatial_shapes, B):
    refs = []
    for (H_, W_) in spatial_shapes:
        ry, rx = jnp.meshgrid((jnp.arange(H_, dtype=jnp.float32) + 0.5) / H_,
                              (jnp.arange(W_, dtype=jnp.float32) + 0.5) / W_,
                              indexing='ij')
        refs.append(jnp.stack([rx.reshape(-1), ry.reshape(-1)], axis=-1))
    ref = jnp.concatenate(refs, axis=0)[None]                    # (1, N, 2)
    ref = jnp.tile(ref, (B, 1, 1))[:, :, None, :]                # (B, N, 1, 2)
    return ref


def init_params(key, dim, n_heads, n_points, cffn_ratio=0.25, init_values=0.0):
    hidden = int(dim * cffn_ratio)
    k_inj, k_ext, k_ffn = jax.random.split(key, 3)

    def xavier(k, fi, fo):
        a = math.sqrt(6.0 / (fi + fo))
        return jax.random.uniform(k, (fi, fo), jnp.float32, -a, a)

    def default_lin(kw, kb, fi, fo):
        bound = 1.0 / math.sqrt(fi)
        return (jax.random.uniform(kw, (fi, fo), jnp.float32, -bound, bound),
                jax.random.uniform(kb, (fo,), jnp.float32, -bound, bound))

    def attn_params(k, n_levels):
        k1, k2 = jax.random.split(k)
        thetas = jnp.arange(n_heads, dtype=jnp.float32) * (2.0 * math.pi / n_heads)
        grid = jnp.stack([jnp.cos(thetas), jnp.sin(thetas)], -1)
        grid = grid / jnp.max(jnp.abs(grid), axis=-1, keepdims=True)
        grid = jnp.tile(grid[:, None, None, :], (1, n_levels, n_points, 1))
        grid = grid * jnp.arange(1, n_points + 1, dtype=jnp.float32)[None, None, :, None]
        return dict(
            sampling_offsets_w=jnp.zeros((dim, n_heads * n_levels * n_points * 2), jnp.float32),
            sampling_offsets_b=grid.reshape(-1),
            attention_weights_w=jnp.zeros((dim, n_heads * n_levels * n_points), jnp.float32),
            attention_weights_b=jnp.zeros((n_heads * n_levels * n_points,), jnp.float32),
            value_proj_w=xavier(k1, dim, dim),
            value_proj_b=jnp.zeros((dim,), jnp.float32),
            output_proj_w=xavier(k2, dim, dim),
            output_proj_b=jnp.zeros((dim,), jnp.float32),
        )

    def ln():
        return jnp.ones((dim,), jnp.float32), jnp.zeros((dim,), jnp.float32)

    kk = jax.random.split(k_ffn, 6)
    fc1_w, fc1_b = default_lin(kk[0], kk[1], dim, hidden)
    fc2_w, fc2_b = default_lin(kk[2], kk[3], hidden, dim)
    dw_bound = 1.0 / 3.0  # depthwise conv fan_in = 1*3*3
    dw_w = jax.random.uniform(kk[4], (3, 3, hidden), jnp.float32, -dw_bound, dw_bound)
    dw_b = jax.random.uniform(kk[5], (hidden,), jnp.float32, -dw_bound, dw_bound)

    inj_qn = ln(); inj_fn = ln(); ext_qn = ln(); ext_fn = ln(); ffn_n = ln()
    return dict(
        injector=dict(
            query_norm_w=inj_qn[0], query_norm_b=inj_qn[1],
            feat_norm_w=inj_fn[0], feat_norm_b=inj_fn[1],
            attn=attn_params(k_inj, 3),
            gamma=init_values * jnp.ones((dim,), jnp.float32),
        ),
        extractor=dict(
            query_norm_w=ext_qn[0], query_norm_b=ext_qn[1],
            feat_norm_w=ext_fn[0], feat_norm_b=ext_fn[1],
            attn=attn_params(k_ext, 1),
            ffn_norm_w=ffn_n[0], ffn_norm_b=ffn_n[1],
            ffn=dict(fc1_w=fc1_w, fc1_b=fc1_b, fc2_w=fc2_w, fc2_b=fc2_b,
                     dw_w=dw_w, dw_b=dw_b),
        ),
    )


if __name__ == "__main__":
    B, H, W = 2, 4, 4
    dim, n_heads, n_points = 32, 4, 4

    key = jax.random.PRNGKey(0)
    kx, kc, kcls, kp = jax.random.split(key, 4)

    N_x = H * W                                                  # ViT tokens
    N_c = (2 * H) * (2 * W) + H * W + (H // 2) * (W // 2)        # adapter tokens (21*HW/4)

    x = jax.random.normal(kx, (B, N_x, dim), jnp.float32)
    c = jax.random.normal(kc, (B, N_c, dim), jnp.float32)
    cls = jax.random.normal(kcls, (B, 1, dim), jnp.float32)

    # deform_inputs1: injector (query = x at (H,W); feat = c over 3 scales)
    ss1 = ((2 * H, 2 * W), (H, W), (H // 2, W // 2))
    lsi1 = (0, (2 * H) * (2 * W), (2 * H) * (2 * W) + H * W)
    ref1 = get_reference_points(((H, W),), B)
    # deform_inputs2: extractor (query = c over 3 scales; feat = x at (H,W))
    ss2 = ((H, W),)
    lsi2 = (0,)
    ref2 = get_reference_points(ss1, B)

    # nonzero init_values so the injector attention path is actually exercised
    params = init_params(kp, dim, n_heads, n_points, init_values=0.01)

    x_out, c_out, cls_out = interaction_block_with_cls(
        params, x, c, cls, (),                      # `blocks` passed externally; empty here
        (ref1, ss1, lsi1), (ref2, ss2, lsi2), H, W, n_heads, n_points)

    jax.block_until_ready((x_out, c_out, cls_out))
    assert x_out.shape == (B, N_x, dim)
    assert c_out.shape == (B, N_c, dim)
    assert cls_out.shape == (B, 1, dim)
    print("KERNEL_OK")
</pallas_src>

<mosaic_0001>
module attributes {stable_mosaic.version = 11 : i64} {
  func.func @kernel(%arg0: i32, %arg1: memref<168x32xf32, #tpu.memory_space<vmem>>, %arg2: memref<1x32xf32, #tpu.memory_space<vmem>>, %arg3: memref<1x32xf32, #tpu.memory_space<vmem>>, %arg4: memref<32x32xbf16, #tpu.memory_space<vmem>>, %arg5: memref<1x32xf32, #tpu.memory_space<vmem>>, %arg6: memref<168x32xbf16, #tpu.memory_space<vmem>>) attributes {dimension_semantics = [#tpu.dimension_semantics<parallel>], iteration_bounds = array<i64: 1>, scalar_prefetch = 0 : i64, scratch_operands = 0 : i64, tpu.core_type = #tpu.core_type<tc>, window_params = [{transform_indices = @transform_0, window_bounds = array<i64: 168, 32>}, {pipeline_mode = #tpu.pipeline_mode<synchronous>, transform_indices = @transform_1, window_bounds = array<i64: 1, 32>}, {pipeline_mode = #tpu.pipeline_mode<synchronous>, transform_indices = @transform_2, window_bounds = array<i64: 1, 32>}, {pipeline_mode = #tpu.pipeline_mode<synchronous>, transform_indices = @transform_3, window_bounds = array<i64: 32, 32>}, {pipeline_mode = #tpu.pipeline_mode<synchronous>, transform_indices = @transform_4, window_bounds = array<i64: 1, 32>}, {transform_indices = @transform_5, window_bounds = array<i64: 168, 32>}]} {
    %c0 = arith.constant 0 : index
    %c0_0 = arith.constant 0 : index
    %0 = vector.load %arg1[%c0, %c0_0] : memref<168x32xf32, #tpu.memory_space<vmem>>, vector<168x32xf32>
    %cst = arith.constant dense<0.000000e+00> : vector<168xf32>
    %1 = vector.multi_reduction <add>, %0, %cst [1] : vector<168x32xf32> to vector<168xf32>
    %2 = vector.shape_cast %1 : vector<168xf32> to vector<168x1xf32>
    %cst_1 = arith.constant 3.200000e+01 : f32
    %3 = vector.broadcast %cst_1 : f32 to vector<168x1xf32>
    %4 = arith.divf %2, %3 : vector<168x1xf32>
    %5 = vector.broadcast %4 : vector<168x1xf32> to vector<168x32xf32>
    %6 = arith.subf %0, %5 : vector<168x32xf32>
    %7 = arith.mulf %6, %6 : vector<168x32xf32>
    %cst_2 = arith.constant dense<0.000000e+00> : vector<168xf32>
    %8 = vector.multi_reduction <add>, %7, %cst_2 [1] : vector<168x32xf32> to vector<168xf32>
    %9 = vector.shape_cast %8 : vector<168xf32> to vector<168x1xf32>
    %cst_3 = arith.constant 3.200000e+01 : f32
    %10 = vector.broadcast %cst_3 : f32 to vector<168x1xf32>
    %11 = arith.divf %9, %10 : vector<168x1xf32>
    %cst_4 = arith.constant 9.99999997E-7 : f32
    %12 = vector.broadcast %cst_4 : f32 to vector<168x1xf32>
    %13 = arith.addf %11, %12 : vector<168x1xf32>
    %14 = math.rsqrt %13 : vector<168x1xf32>
    %15 = vector.broadcast %14 : vector<168x1xf32> to vector<168x32xf32>
    %16 = arith.mulf %6, %15 : vector<168x32xf32>
    %c0_5 = arith.constant 0 : index
    %c0_6 = arith.constant 0 : index
    %17 = vector.load %arg2[%c0_5, %c0_6] : memref<1x32xf32, #tpu.memory_space<vmem>>, vector<1x32xf32>
    %18 = vector.broadcast %17 : vector<1x32xf32> to vector<168x32xf32>
    %19 = arith.mulf %16, %18 : vector<168x32xf32>
    %c0_7 = arith.constant 0 : index
    %c0_8 = arith.constant 0 : index
    %20 = vector.load %arg3[%c0_7, %c0_8] : memref<1x32xf32, #tpu.memory_space<vmem>>, vector<1x32xf32>
    %21 = vector.broadcast %20 : vector<1x32xf32> to vector<168x32xf32>
    %22 = arith.addf %19, %21 : vector<168x32xf32>
    %23 = arith.truncf %22 : vector<168x32xf32> to vector<168x32xbf16>
    %c0_9 = arith.constant 0 : index
    %c0_10 = arith.constant 0 : index
    %24 = vector.load %arg4[%c0_9, %c0_10] : memref<32x32xbf16, #tpu.memory_space<vmem>>, vector<32x32xbf16>
    %cst_11 = arith.constant dense<0.000000e+00> : vector<168x32xf32>
    %25 = tpu.matmul %23, %24, %cst_11 {dimension_numbers = #tpu.dot_dimension_numbers<[1], [0], [0], [1], [0, 0, 1, 1], [], []>} : vector<168x32xbf16>, vector<32x32xbf16>, vector<168x32xf32> -> vector<168x32xf32>
    %c0_12 = arith.constant 0 : index
    %c0_13 = arith.constant 0 : index
    %26 = vector.load %arg5[%c0_12, %c0_13] : memref<1x32xf32, #tpu.memory_space<vmem>>, vector<1x32xf32>
    %27 = vector.broadcast %26 : vector<1x32xf32> to vector<168x32xf32>
    %28 = arith.addf %25, %27 : vector<168x32xf32>
    %29 = arith.truncf %28 : vector<168x32xf32> to vector<168x32xbf16>
    %c0_14 = arith.constant 0 : index
    %c0_15 = arith.constant 0 : index
    %30 = vector.load %arg6[%c0_14, %c0_15] : memref<168x32xbf16, #tpu.memory_space<vmem>>, vector<168x32xbf16>
    tpu.vector_store %arg6[%c0_14, %c0_15], %29 {strides = array<i32>} : memref<168x32xbf16, #tpu.memory_space<vmem>>, vector<168x32xbf16>,
    return
  }
  func.func @transform_0(%arg0: i32) -> (i32, i32) {
    %c0_i32 = arith.constant 0 : i32
    %c0_i32_0 = arith.constant 0 : i32
    return %arg0, %c0_i32 : i32, i32
  }
  func.func @transform_1(%arg0: i32) -> (i32, i32) {
    %c0_i32 = arith.constant 0 : i32
    %c0_i32_0 = arith.constant 0 : i32
    %c0_i32_1 = arith.constant 0 : i32
    return %c0_i32, %c0_i32_0 : i32, i32
  }
  func.func @transform_2(%arg0: i32) -> (i32, i32) {
    %c0_i32 = arith.constant 0 : i32
    %c0_i32_0 = arith.constant 0 : i32
    %c0_i32_1 = arith.constant 0 : i32
    return %c0_i32, %c0_i32_0 : i32, i32
  }
  func.func @transform_3(%arg0: i32) -> (i32, i32) {
    %c0_i32 = arith.constant 0 : i32
    %c0_i32_0 = arith.constant 0 : i32
    %c0_i32_1 = arith.constant 0 : i32
    return %c0_i32, %c0_i32_0 : i32, i32
  }
  func.func @transform_4(%arg0: i32) -> (i32, i32) {
    %c0_i32 = arith.constant 0 : i32
    %c0_i32_0 = arith.constant 0 : i32
    %c0_i32_1 = arith.constant 0 : i32
    return %c0_i32, %c0_i32_0 : i32, i32
  }
  func.func @transform_5(%arg0: i32) -> (i32, i32) {
    %c0_i32 = arith.constant 0 : i32
    %c0_i32_0 = arith.constant 0 : i32
    return %arg0, %c0_i32 : i32, i32
  }
}

</mosaic_0001>

<bundles_post_ra>
// kernel: tpu_custom_call.1
= control target key start
LH: loop header
LB: loop body
LE: loop exit
PB: predicated region body
PF: predicated region fallthrough
CT: control target
= control target key end

     0   :  { %vm42_vm0 = vcmask 261120   ;;  %vm841_vm1 = vmmov 0   ;;  %vm645_vm2 = vcmask 257024   ;;  %s1371_s0 = inlined_call_operand.vmem [shape: f32[168,32], index: 0, kind: input, shape index: {}]   ;;  %s1372_s3 = inlined_call_operand.vmem [shape: bf16[32,32], index: 3, kind: input, shape index: {}]   ;;  %s1373_s1 = inlined_call_operand.vmem [shape: f32[1,32], index: 1, kind: input, shape index: {}]   ;;  %s1374_s2 = inlined_call_operand.vmem [shape: f32[1,32], index: 2, kind: input, shape index: {}]   ;;  %s1375_s4 = inlined_call_operand.vmem [shape: f32[1,32], index: 4, kind: input, shape index: {}]   ;;  %s1376_s5 = inlined_call_operand.vmem [shape: bf16[168,32], index: 5, kind: output, shape index: {}]  }
   0x1   :  { %v875_v0 = vld [vmem:[%s1371_s0] sm:$0xff]  ;;  %v880_v1 = vld [vmem:[%s1371_s0 + $0x10] sm:$0xff]  ;;  %v885_v2 = vld [vmem:[%s1371_s0 + $0x8] sm:$0xff] }
   0x2   :  { %v43_v3 = vsel %vm42_vm0, %v875_v0, 0.0  ;;  %v49_v4 = vsel %vm42_vm0, %v880_v1, 0.0  ;;  %v894_v5 = vld [vmem:[%s1371_s0 + $0x18] sm:$0xff]  ;;  %v46_v6 = vsel %vm42_vm0, %v885_v2, 0.0  ;;  %v903_v8 = vld [vmem:[%s1371_s0 + $0x60] sm:$0xff]  ;;  %v908_v9 = vld [vmem:[%s1371_s0 + $0x68] sm:$0xff] }
   0x3   :  { %44 = vadd.xlane.f32.xlu0 %v43_v3  ;;  %50 = vadd.xlane.f32.xlu1 %v49_v4  ;;  %v52_v7 = vsel %vm42_vm0, %v894_v5, 0.0  ;;  %v79_v10 = vsel %vm42_vm0, %v903_v8, 0.0  ;;  %v82_v11 = vsel %vm42_vm0, %v908_v9, 0.0  ;;  %v917_v12 = vld [vmem:[%s1371_s0 + $0x20] sm:$0xff]  ;;  %v922_v13 = vld [vmem:[%s1371_s0 + $0x28] sm:$0xff]  ;;  %v931_v16 = vld [vmem:[%s1371_s0 + $0x70] sm:$0xff] }
   0x4   :  { %v55_v14 = vsel %vm42_vm0, %v917_v12, 0.0  ;;  %v58_v15 = vsel %vm42_vm0, %v922_v13, 0.0  ;;  %v936_v17 = vld [vmem:[%s1371_s0 + $0x78] sm:$0xff]  ;;  %v85_v18 = vsel %vm42_vm0, %v931_v16, 0.0  ;;  %v945_v20 = vld [vmem:[%s1371_s0 + $0x30] sm:$0xff]  ;;  %v959_v24 = vld [vmem:[%s1371_s0 + $0x80] sm:$0xff] }
   0x5   :  { %v88_v19 = vsel %vm42_vm0, %v936_v17, 0.0  ;;  %v950_v21 = vld [vmem:[%s1371_s0 + $0x38] sm:$0xff]  ;;  %v61_v22 = vsel %vm42_vm0, %v945_v20, 0.0  ;;  %v964_v25 = vld [vmem:[%s1371_s0 + $0x88] sm:$0xff]  ;;  %v91_v26 = vsel %vm42_vm0, %v959_v24, 0.0  ;;  %v973_v28 = vld [vmem:[%s1371_s0 + $0x40] sm:$0xff] }
   0x6   :  { %v64_v23 = vsel %vm42_vm0, %v950_v21, 0.0  ;;  %v94_v27 = vsel %vm42_vm0, %v964_v25, 0.0  ;;  %v978_v29 = vld [vmem:[%s1371_s0 + $0x48] sm:$0xff]  ;;  %v67_v30 = vsel %vm42_vm0, %v973_v28, 0.0  ;;  %v987_v32 = vld [vmem:[%s1371_s0 + $0x90] sm:$0xff]  ;;  %v992_v33 = vld [vmem:[%s1371_s0 + $0x98] sm:$0xff] }
   0x7   :  { %47 = vadd.xlane.f32.xlu0 %v46_v6  ;;  %53 = vadd.xlane.f32.xlu1 %v52_v7  ;;  %v70_v31 = vsel %vm42_vm0, %v978_v29, 0.0  ;;  %v97_v34 = vsel %vm42_vm0, %v987_v32, 0.0  ;;  %v100_v35 = vsel %vm42_vm0, %v992_v33, 0.0  ;;  %v1001_v36 = vld [vmem:[%s1371_s0 + $0x50] sm:$0xff]  ;;  %v1006_v37 = vld [vmem:[%s1371_s0 + $0x58] sm:$0xff]  ;;  %v1015_v40 = vld [vmem:[%s1371_s0 + $0xa0] sm:$0xff] }
   0x8   :  { %v73_v38 = vsel %vm42_vm0, %v1001_v36, 0.0  ;;  %v76_v39 = vsel %vm42_vm0, %v1006_v37, 0.0  ;;  %v103_v41 = vsel %vm42_vm0, %v1015_v40, 0.0 }
   0xb   :  { %80 = vadd.xlane.f32.xlu0 %v79_v10  ;;  %83 = vadd.xlane.f32.xlu1 %v82_v11 }
   0xf   :  { %56 = vadd.xlane.f32.xlu0 %v55_v14  ;;  %59 = vadd.xlane.f32.xlu1 %v58_v15 }
  0x13   :  { %86 = vadd.xlane.f32.xlu0 %v85_v18  ;;  %89 = vadd.xlane.f32.xlu1 %v88_v19 }
  0x17   :  { %62 = vadd.xlane.f32.xlu0 %v61_v22  ;;  %65 = vadd.xlane.f32.xlu1 %v64_v23 }
  0x1b   :  { %92 = vadd.xlane.f32.xlu0 %v91_v26  ;;  %95 = vadd.xlane.f32.xlu1 %v94_v27 }
  0x1f   :  { %68 = vadd.xlane.f32.xlu0 %v67_v30  ;;  %71 = vadd.xlane.f32.xlu1 %v70_v31 }
  0x23   :  { %98 = vadd.xlane.f32.xlu0 %v97_v34  ;;  %101 = vadd.xlane.f32.xlu1 %v100_v35 }
  0x27   :  { %74 = vadd.xlane.f32.xlu0 %v73_v38  ;;  %77 = vadd.xlane.f32.xlu1 %v76_v39 }
  0x2b   :  { %104 = vadd.xlane.f32.xlu0 %v103_v41 }
  0x90   :  { %v45_v42 = vpop.xlane.xlu0 %44  ;;  %v51_v43 = vpop.xlane.xlu1 %50 }
  0x91   :  { %v107_v44 = vmul.f32 0.03125, %v45_v42  ;;  %v109_v45 = vmul.f32 0.03125, %v51_v43 }
  0x93   :  { %v1020_v46 = vsub.f32 %v875_v0, %v107_v44  ;;  %v1023_v47 = vsub.f32 %v880_v1, %v109_v45 }
  0x94   :  { %v48_v48 = vpop.xlane.xlu0 %47  ;;  %v54_v49 = vpop.xlane.xlu1 %53 }
  0x95   :  { %v108_v50 = vmul.f32 0.03125, %v48_v48  ;;  %v110_v51 = vmul.f32 0.03125, %v54_v49  ;;  %v149_v52 = vmul.f32 %v1020_v46, %v1020_v46  ;;  %v151_v53 = vmul.f32 %v1023_v47, %v1023_v47 }
  0x97   :  { %v1030_v54 = vsub.f32 %v885_v2, %v108_v50  ;;  %v1033_v55 = vsub.f32 %v894_v5, %v110_v51  ;;  %v170_v56 = vsel %vm42_vm0, %v149_v52, 0.0  ;;  %v176_v59 = vsel %vm42_vm0, %v151_v53, 0.0 }
  0x98   :  { %171 = vadd.xlane.f32.xlu1 %v170_v56  ;;  %v81_v57 = vpop.xlane.xlu0 %80  ;;  %v84_v58 = vpop.xlane.xlu1 %83 }
  0x99   :  { %v119_v60 = vmul.f32 0.03125, %v81_v57  ;;  %v120_v61 = vmul.f32 0.03125, %v84_v58  ;;  %v150_v62 = vmul.f32 %v1030_v54, %v1030_v54  ;;  %v152_v63 = vmul.f32 %v1033_v55, %v1033_v55 }
  0x9b   :  { %v1042_v0 = vsub.f32 %v903_v8, %v119_v60  ;;  %v1045_v1 = vsub.f32 %v908_v9, %v120_v61  ;;  %v173_v2 = vsel %vm42_vm0, %v150_v62, 0.0  ;;  %v179_v5 = vsel %vm42_vm0, %v152_v63, 0.0 }
  0x9c   :  { %177 = vadd.xlane.f32.xlu1 %v176_v59  ;;  %174 = vadd.xlane.f32.xlu0 %v173_v2  ;;  %v57_v3 = vpop.xlane.xlu0 %56  ;;  %v60_v4 = vpop.xlane.xlu1 %59 }
  0x9d   :  { %v111_v6 = vmul.f32 0.03125, %v57_v3  ;;  %v112_v7 = vmul.f32 0.03125, %v60_v4  ;;  %v161_v10 = vmul.f32 %v1042_v0, %v1042_v0  ;;  %v162_v8 = vmul.f32 %v1045_v1, %v1045_v1 }
  0x9f   :  { %v1054_v11 = vsub.f32 %v917_v12, %v111_v6  ;;  %v1057_v9 = vsub.f32 %v922_v13, %v112_v7  ;;  %v206_v14 = vsel %vm42_vm0, %v161_v10, 0.0  ;;  %v209_v19 = vsel %vm42_vm0, %v162_v8, 0.0 }
  0xa0   :  { %180 = vadd.xlane.f32.xlu0 %v179_v5  ;;  %207 = vadd.xlane.f32.xlu1 %v206_v14  ;;  %v87_v15 = vpop.xlane.xlu0 %86  ;;  %v90_v18 = vpop.xlane.xlu1 %89 }
  0xa1   :  { %v121_v22 = vmul.f32 0.03125, %v87_v15  ;;  %v122_v23 = vmul.f32 0.03125, %v90_v18  ;;  %v153_v26 = vmul.f32 %v1054_v11, %v1054_v11  ;;  %v154_v12 = vmul.f32 %v1057_v9, %v1057_v9 }
  0xa3   :  { %v1066_v27 = vsub.f32 %v931_v16, %v121_v22  ;;  %v1069_v13 = vsub.f32 %v936_v17, %v122_v23  ;;  %v182_v30 = vsel %vm42_vm0, %v153_v26, 0.0  ;;  %v185_v35 = vsel %vm42_vm0, %v154_v12, 0.0 }
  0xa4   :  { %210 = vadd.xlane.f32.xlu0 %v209_v19  ;;  %183 = vadd.xlane.f32.xlu1 %v182_v30  ;;  %v63_v31 = vpop.xlane.xlu0 %62  ;;  %v66_v34 = vpop.xlane.xlu1 %65 }
  0xa5   :  { %v113_v38 = vmul.f32 0.03125, %v63_v31  ;;  %v114_v39 = vmul.f32 0.03125, %v66_v34  ;;  %v163_v41 = vmul.f32 %v1066_v27, %v1066_v27  ;;  %v164_v16 = vmul.f32 %v1069_v13, %v1069_v13 }
  0xa7   :  { %v1078_v42 = vsub.f32 %v945_v20, %v113_v38  ;;  %v1081_v17 = vsub.f32 %v950_v21, %v114_v39  ;;  %v212_v43 = vsel %vm42_vm0, %v163_v41, 0.0  ;;  %v215_v48 = vsel %vm42_vm0, %v164_v16, 0.0 }
  0xa8   :  { %186 = vadd.xlane.f32.xlu0 %v185_v35  ;;  %213 = vadd.xlane.f32.xlu1 %v212_v43  ;;  %v93_v44 = vpop.xlane.xlu0 %92  ;;  %v96_v45 = vpop.xlane.xlu1 %95  ;;  %v840_v39 = vmov 0.0  }
  0xa9   :  { %v123_v49 = vmul.f32 0.03125, %v93_v44  ;;  %v124_v50 = vmul.f32 0.03125, %v96_v45  ;;  %v155_v51 = vmul.f32 %v1078_v42, %v1078_v42  ;;  %v156_v20 = vmul.f32 %v1081_v17, %v1081_v17  ;;  %742 = vmatprep.subr.bf16.mxu0 %v840_v39  ;;  %790 = vmatprep.subr.bf16.mxu1 %v840_v39  ;;  %v797_v44 = vld [vmem:[%s1372_s3 + $0x8] sm:$0xff]  }
  0xaa   :  { %746 = vmatprep.mubr.msk.bf16.mxu0 %vm841_vm1, %v840_v39  ;;  %770 = vmatprep.mubr.msk.bf16.mxu1 %vm841_vm1, %v840_v39 }
  0xab   :  { %v1090_v52 = vsub.f32 %v959_v24, %v123_v49  ;;  %v1093_v21 = vsub.f32 %v964_v25, %v124_v50  ;;  %v188_v53 = vsel %vm42_vm0, %v155_v51, 0.0  ;;  %v191_v58 = vsel %vm42_vm0, %v156_v20, 0.0 }
  0xac   :  { %216 = vadd.xlane.f32.xlu0 %v215_v48  ;;  %189 = vadd.xlane.f32.xlu1 %v188_v53  ;;  %v69_v56 = vpop.xlane.xlu0 %68  ;;  %v72_v57 = vpop.xlane.xlu1 %71 }
  0xad   :  { %v115_v59 = vmul.f32 0.03125, %v69_v56  ;;  %v116_v60 = vmul.f32 0.03125, %v72_v57  ;;  %v165_v61 = vmul.f32 %v1090_v52, %v1090_v52  ;;  %v166_v24 = vmul.f32 %v1093_v21, %v1093_v21 }
  0xaf   :  { %v1102_v62 = vsub.f32 %v973_v28, %v115_v59  ;;  %v1105_v25 = vsub.f32 %v978_v29, %v116_v60  ;;  %v218_v63 = vsel %vm42_vm0, %v165_v61, 0.0  ;;  %v221_v4 = vsel %vm42_vm0, %v166_v24, 0.0 }
  0xb0   :  { %192 = vadd.xlane.f32.xlu0 %v191_v58  ;;  %219 = vadd.xlane.f32.xlu1 %v218_v63  ;;  %v99_v2 = vpop.xlane.xlu0 %98  ;;  %v102_v3 = vpop.xlane.xlu1 %101 }
  0xb1   :  { %v125_v5 = vmul.f32 0.03125, %v99_v2  ;;  %v126_v6 = vmul.f32 0.03125, %v102_v3  ;;  %v157_v7 = vmul.f32 %v1102_v62, %v1102_v62  ;;  %v158_v28 = vmul.f32 %v1105_v25, %v1105_v25 }
  0xb3   :  { %v1114_v10 = vsub.f32 %v987_v32, %v125_v5  ;;  %v1117_v29 = vsub.f32 %v992_v33, %v126_v6  ;;  %v194_v8 = vsel %vm42_vm0, %v157_v7, 0.0  ;;  %v197_v18 = vsel %vm42_vm0, %v158_v28, 0.0 }
  0xb4   :  { %222 = vadd.xlane.f32.xlu0 %v221_v4  ;;  %195 = vadd.xlane.f32.xlu1 %v194_v8  ;;  %v75_v14 = vpop.xlane.xlu0 %74  ;;  %v78_v15 = vpop.xlane.xlu1 %77 }
  0xb5   :  { %v117_v19 = vmul.f32 0.03125, %v75_v14  ;;  %v118_v22 = vmul.f32 0.03125, %v78_v15  ;;  %v167_v23 = vmul.f32 %v1114_v10, %v1114_v10  ;;  %v168_v32 = vmul.f32 %v1117_v29, %v1117_v29 }
  0xb7   :  { %v1126_v26 = vsub.f32 %v1001_v36, %v117_v19  ;;  %v1129_v33 = vsub.f32 %v1006_v37, %v118_v22  ;;  %v224_v12 = vsel %vm42_vm0, %v167_v23, 0.0  ;;  %v227_v31 = vsel %vm42_vm0, %v168_v32, 0.0  ;;  %v796_v36 = vld [vmem:[%s1372_s3] sm:$0xff]  }
  0xb8   :  { %198 = vadd.xlane.f32.xlu0 %v197_v18  ;;  %225 = vadd.xlane.f32.xlu1 %v224_v12  ;;  %v105_v30 = vpop.xlane.xlu0 %104  ;;  %v1163_v32 = vld [vmem:[%s1373_s1] ss:$0 sm:$0xff] }
  0xb9   :  { %v127_v34 = vmul.f32 0.03125, %v105_v30  ;;  %v159_v35 = vmul.f32 %v1126_v26, %v1126_v26  ;;  %v160_v38 = vmul.f32 %v1129_v33, %v1129_v33  ;;  %743 = vmatpush3.bf16.msra.mxu0 %v796_v36  ;;  %792 = vmatpush3.bf16.msra.mxu1 %v796_v36 }
  0xba   :  { %744 = vmatprep.subr.bf16.mxu0 %v840_v39  ;;  %791 = vmatprep.subr.bf16.mxu1 %v840_v39 }
  0xbb   :  { %v1143_v37 = vsub.f32 %v1015_v40, %v127_v34  ;;  %v200_v41 = vsel %vm42_vm0, %v159_v35, 0.0  ;;  %v203_v16 = vsel %vm42_vm0, %v160_v38, 0.0 }
  0xbc   :  { %228 = vadd.xlane.f32.xlu0 %v227_v31  ;;  %201 = vadd.xlane.f32.xlu1 %v200_v41 }
  0xbd   :  { %v169_v43 = vmul.f32 %v1143_v37, %v1143_v37  ;;  %745 = vmatpush3.bf16.msra.mxu0 %v797_v44  ;;  %793 = vmatpush3.bf16.msra.mxu1 %v797_v44  ;;  %v1171_v44 = vld [vmem:[%s1374_s2] ss:$0 sm:$0xff] }
  0xbf   :  { %v230_v40 = vsel %vm42_vm0, %v169_v43, 0.0 }
  0xc0   :  { %204 = vadd.xlane.f32.xlu0 %v203_v16  ;;  %231 = vadd.xlane.f32.xlu1 %v230_v40 }
 0x125   :  { %v172_v45 = vpop.xlane.xlu1 %171 }
 0x126   :  { %v233_v48 = vmul.f32 0.03125, %v172_v45 }
 0x128   :  { %v254_v49 = vadd.f32 1e-06, %v233_v48 }
 0x129   :  { %v178_v50 = vpop.xlane.xlu1 %177  ;;  %v175_v51 = vpop.xlane.xlu0 %174 }
 0x12a   :  { %798 = vrsqrt.f32 %v254_v49  ;;  %v235_v20 = vmul.f32 0.03125, %v178_v50  ;;  %v234_v53 = vmul.f32 0.03125, %v175_v51 }
 0x12c   :  { %v256_v56 = vadd.f32 1e-06, %v235_v20  ;;  %v255_v57 = vadd.f32 1e-06, %v234_v53 }
 0x12d   :  { %v208_v58 = vpop.xlane.xlu1 %207  ;;  %v181_v59 = vpop.xlane.xlu0 %180 }
 0x12e   :  { %v245_v60 = vmul.f32 0.03125, %v208_v58  ;;  %v236_v61 = vmul.f32 0.03125, %v181_v59  ;;  %800 = vrsqrt.f32 %v255_v57 }
 0x12f   :  { %802 = vrsqrt.f32 %v256_v56 }
 0x130   :  { %v266_v24 = vadd.f32 1e-06, %v245_v60  ;;  %v257_v63 = vadd.f32 1e-06, %v236_v61 }
 0x131   :  { %v184_v2 = vpop.xlane.xlu1 %183  ;;  %v211_v3 = vpop.xlane.xlu0 %210 }
 0x132   :  { %804 = vrsqrt.f32 %v266_v24  ;;  %v237_v4 = vmul.f32 0.03125, %v184_v2  ;;  %v246_v5 = vmul.f32 0.03125, %v211_v3 }
 0x133   :  { %806 = vrsqrt.f32 %v257_v63 }
 0x134   :  { %v799_v6 = vpop.eup %798  ;;  %v258_v7 = vadd.f32 1e-06, %v237_v4  ;;  %v267_v28 = vadd.f32 1e-06, %v246_v5 }
 0x135   :  { %v214_v8 = vpop.xlane.xlu1 %213  ;;  %v187_v14 = vpop.xlane.xlu0 %186  ;;  %v296_v19 = vmul.f32 %v799_v6, %v1020_v46 }
 0x136   :  { %808 = vrsqrt.f32 %v258_v7  ;;  %v247_v15 = vmul.f32 0.03125, %v214_v8  ;;  %v238_v18 = vmul.f32 0.03125, %v187_v14 }
 0x137   :  { %810 = vrsqrt.f32 %v267_v28  ;;  %v324_v46 = vmul.f32 %v1163_v32, %v296_v19 }
 0x138   :  { %v268_v22 = vadd.f32 1e-06, %v247_v15  ;;  %v259_v23 = vadd.f32 1e-06, %v238_v18  ;;  %v801_v12 = vpop.eup %800 }
 0x139   :  { %v190_v30 = vpop.xlane.xlu1 %189  ;;  %v217_v31 = vpop.xlane.xlu0 %216  ;;  %v297_v35 = vmul.f32 %v801_v12, %v1030_v54  ;;  %v352_v56 = vadd.f32 %v1171_v44, %v324_v46 }
 0x13a   :  { %v803_v34 = vpop.eup %802  ;;  %812 = vrsqrt.f32 %v268_v22  ;;  %v239_v38 = vmul.f32 0.03125, %v190_v30  ;;  %v248_v36 = vmul.f32 0.03125, %v217_v31 }
 0x13b   :  { %814 = vrsqrt.f32 %v259_v23  ;;  %v325_v43 = vmul.f32 %v1163_v32, %v297_v35  ;;  %v298_v45 = vmul.f32 %v803_v34, %v1023_v47 }
 0x13c   :  { %v805_v41 = vpop.eup %804  ;;  %v269_v16 = vadd.f32 1e-06, %v248_v36  ;;  %v260_v48 = vadd.f32 1e-06, %v239_v38 }
 0x13d   :  { %v807_v40 = vpop.eup %806  ;;  %v220_v54 = vpop.xlane.xlu1 %219  ;;  %v308_v53 = vmul.f32 %v805_v41, %v1042_v0  ;;  %v353_v57 = vadd.f32 %v1171_v44, %v325_v43  ;;  %v326_v2 = vmul.f32 %v1163_v32, %v298_v45 }
 0x13e   :  { %v193_v49 = vpop.xlane.xlu0 %192  ;;  %v299_v50 = vmul.f32 %v807_v40, %v1033_v55  ;;  %v249_v51 = vmul.f32 0.03125, %v220_v54  ;;  %816 = vrsqrt.f32 %v269_v16 }
 0x13f   :  { %v240_v20 = vmul.f32 0.03125, %v193_v49  ;;  %818 = vrsqrt.f32 %v260_v48  ;;  %v373_v24 = vpack.c.bf16 %v353_v57, %v352_v56  ;;  %v336_v5 = vmul.f32 %v1163_v32, %v308_v53 }
 0x140   :  { %v809_v58 = vpop.eup %808  ;;  %v270_v59 = vadd.f32 1e-06, %v249_v51  ;;  %v327_v55 = vmul.f32 %v1163_v32, %v299_v50  ;;  %v354_v30 = vadd.f32 %v1171_v44, %v326_v2 }
 0x141   :  { %v261_v60 = vadd.f32 1e-06, %v240_v20  ;;  %v811_v61 = vpop.eup %810  ;;  %v196_v47 = vpop.xlane.xlu1 %195  ;;  %747 = vmatmul.mubr.msk.bf16.vlgmr.msra.gmra.mrb[0].mxu0 %vm42_vm0, %v373_v24  ;;  %v300_v7 = vmul.f32 %v809_v58, %v1054_v11  ;;  %v364_v31 = vadd.f32 %v1171_v44, %v336_v5 }
 0x142   :  { %v223_v63 = vpop.xlane.xlu0 %222  ;;  %v309_v3 = vmul.f32 %v811_v61, %v1045_v1  ;;  %820 = vrsqrt.f32 %v270_v59  ;;  %v241_v0 = vmul.f32 0.03125, %v196_v47  ;;  %750 = vmatprep.mubr.msk.bf16.mxu0 %vm841_vm1, %v840_v39  ;;  %v355_v19 = vadd.f32 %v1171_v44, %v327_v55 }
 0x143   :  { %v250_v4 = vmul.f32 0.03125, %v223_v63  ;;  %822 = vrsqrt.f32 %v261_v60  ;;  %v328_v36 = vmul.f32 %v1163_v32, %v300_v7 }
 0x144   :  { %v813_v6 = vpop.eup %812  ;;  %v337_v8 = vmul.f32 %v1163_v32, %v309_v3  ;;  %v262_v15 = vadd.f32 1e-06, %v241_v0  ;;  %v374_v16 = vpack.c.bf16 %v355_v19, %v354_v30 }
 0x145   :  { %v271_v28 = vadd.f32 1e-06, %v250_v4  ;;  %v815_v14 = vpop.eup %814  ;;  %v226_v1 = vpop.xlane.xlu1 %225  ;;  %v310_v11 = vmul.f32 %v813_v6, %v1066_v27  ;;  %v356_v58 = vadd.f32 %v1171_v44, %v328_v36 }
 0x146   :  { %v199_v18 = vpop.xlane.xlu0 %198  ;;  %v301_v22 = vmul.f32 %v815_v14, %v1057_v9  ;;  %v251_v23 = vmul.f32 0.03125, %v226_v1  ;;  %v365_v34 = vadd.f32 %v1171_v44, %v337_v8 }
 0x147   :  { %v242_v12 = vmul.f32 0.03125, %v199_v18  ;;  %824 = vrsqrt.f32 %v271_v28  ;;  %v338_v49 = vmul.f32 %v1163_v32, %v310_v11 }
 0x148   :  { %v272_v35 = vadd.f32 1e-06, %v251_v23  ;;  %v817_v46 = vpop.eup %816  ;;  %826 = vrsqrt.f32 %v262_v15  ;;  %v379_v9 = vpack.c.bf16 %v365_v34, %v364_v31  ;;  %v329_v40 = vmul.f32 %v1163_v32, %v301_v22 }
 0x149   :  { %v263_v38 = vadd.f32 1e-06, %v242_v12  ;;  %v202_v41 = vpop.xlane.xlu1 %201  ;;  %v311_v45 = vmul.f32 %v817_v46, %v1069_v13  ;;  %v819_v54 = vpop.eup %818  ;;  %751 = vmatmul.mubr.msk.bf16.gmra.mrb[4].mxu0 %vm42_vm0, %v374_v16  ;;  %v366_v2 = vadd.f32 %v1171_v44, %v338_v49 }
 0x14a   :  { %v229_v43 = vpop.xlane.xlu0 %228  ;;  %828 = vrsqrt.f32 %v272_v35  ;;  %v243_v27 = vmul.f32 0.03125, %v202_v41  ;;  %771 = vmatmul.mubr.msk.bf16.vlgmr.msra.gmra.mrb[0].mxu1 %vm42_vm0, %v379_v9  ;;  %754 = vmatprep.mubr.msk.bf16.mxu0 %vm841_vm1, %v840_v39  ;;  %v357_v59 = vadd.f32 %v1171_v44, %v329_v40  ;;  %v302_v63 = vmul.f32 %v819_v54, %v1078_v42 }
 0x14b   :  { %v252_v48 = vmul.f32 0.03125, %v229_v43  ;;  %830 = vrsqrt.f32 %v263_v38  ;;  %774 = vmatprep.mubr.msk.bf16.mxu1 %vm841_vm1, %v840_v39  ;;  %v339_v13 = vmul.f32 %v1163_v32, %v311_v45 }
 0x14c   :  { %v821_v50 = vpop.eup %820  ;;  %v264_v53 = vadd.f32 1e-06, %v243_v27  ;;  %v375_v5 = vpack.c.bf16 %v357_v59, %v356_v58  ;;  %v330_v42 = vmul.f32 %v1163_v32, %v302_v63 }
 0x14d   :  { %v273_v51 = vadd.f32 1e-06, %v252_v48  ;;  %v823_v20 = vpop.eup %822  ;;  %v232_v56 = vpop.xlane.xlu1 %231  ;;  %v312_v60 = vmul.f32 %v821_v50, %v1090_v52  ;;  %v367_v55 = vadd.f32 %v1171_v44, %v339_v13 }
 0x14e   :  { %v205_v57 = vpop.xlane.xlu0 %204  ;;  %v303_v61 = vmul.f32 %v823_v20, %v1081_v17  ;;  %v253_v47 = vmul.f32 0.03125, %v232_v56  ;;  %v358_v12 = vadd.f32 %v1171_v44, %v330_v42 }
 0x14f   :  { %v244_v24 = vmul.f32 0.03125, %v205_v57  ;;  %832 = vrsqrt.f32 %v273_v51  ;;  %v380_v6 = vpack.c.bf16 %v367_v55, %v366_v2  ;;  %v340_v17 = vmul.f32 %v1163_v32, %v312_v60 }
 0x150   :  { %v274_v3 = vadd.f32 1e-06, %v253_v47  ;;  %834 = vrsqrt.f32 %v264_v53  ;;  %v331_v7 = vmul.f32 %v1163_v32, %v303_v61 }
 0x151   :  { %v265_v0 = vadd.f32 1e-06, %v244_v24  ;;  %v825_v4 = vpop.eup %824  ;;  %755 = vmatmul.mubr.msk.bf16.gmra.mrb[8].mxu0 %vm42_vm0, %v375_v5  ;;  %v368_v19 = vadd.f32 %v1171_v44, %v340_v17 }
 0x152   :  { %v313_v52 = vmul.f32 %v825_v4, %v1093_v21  ;;  %836 = vrsqrt.f32 %v274_v3  ;;  %v827_v28 = vpop.eup %826  ;;  %775 = vmatmul.mubr.msk.bf16.gmra.mrb[4].mxu1 %vm42_vm0, %v380_v6  ;;  %758 = vmatprep.mubr.msk.bf16.mxu0 %vm841_vm1, %v840_v39  ;;  %v359_v15 = vadd.f32 %v1171_v44, %v331_v7 }
 0x153   :  { %838 = vrsqrt.f32 %v265_v0  ;;  %778 = vmatprep.mubr.msk.bf16.mxu1 %vm841_vm1, %v840_v39  ;;  %v304_v23 = vmul.f32 %v827_v28, %v1102_v62 }
 0x154   :  { %v829_v8 = vpop.eup %828  ;;  %v341_v21 = vmul.f32 %v1163_v32, %v313_v52  ;;  %v376_v31 = vpack.c.bf16 %v359_v15, %v358_v12 }
 0x155   :  { %v831_v14 = vpop.eup %830  ;;  %v314_v1 = vmul.f32 %v829_v8, %v1114_v10 }
 0x156   :  { %v305_v18 = vmul.f32 %v831_v14, %v1105_v25  ;;  %v369_v22 = vadd.f32 %v1171_v44, %v341_v21  ;;  %v332_v25 = vmul.f32 %v1163_v32, %v304_v23 }
 0x157   :  { %v342_v38 = vmul.f32 %v1163_v32, %v314_v1 }
 0x158   :  { %v381_v30 = vpack.c.bf16 %v369_v22, %v368_v19  ;;  %v333_v34 = vmul.f32 %v1163_v32, %v305_v18  ;;  %v360_v45 = vadd.f32 %v1171_v44, %v332_v25 }
 0x159   :  { %v833_v11 = vpop.eup %832  ;;  %759 = vmatmul.mubr.msk.bf16.gmra.mrb[12].mxu0 %vm42_vm0, %v376_v31  ;;  %v370_v9 = vadd.f32 %v1171_v44, %v342_v38 }
 0x15a   :  { %v315_v35 = vmul.f32 %v833_v11, %v1117_v29  ;;  %v835_v10 = vpop.eup %834  ;;  %779 = vmatmul.mubr.msk.bf16.gmra.mrb[8].mxu1 %vm42_vm0, %v381_v30  ;;  %762 = vmatprep.mubr.msk.bf16.mxu0 %vm841_vm1, %v840_v39  ;;  %v361_v41 = vadd.f32 %v1171_v44, %v333_v34 }
 0x15b   :  { %782 = vmatprep.mubr.msk.bf16.mxu1 %vm841_vm1, %v840_v39  ;;  %v306_v40 = vmul.f32 %v835_v10, %v1126_v26 }
 0x15c   :  { %v837_v36 = vpop.eup %836  ;;  %v343_v62 = vmul.f32 %v1163_v32, %v315_v35  ;;  %v377_v48 = vpack.c.bf16 %v361_v41, %v360_v45 }
 0x15d   :  { %v839_v46 = vpop.eup %838  ;;  %v316_v29 = vmul.f32 %v837_v36, %v1143_v37 }
 0x15e   :  { %v307_v16 = vmul.f32 %v839_v46, %v1129_v33  ;;  %v371_v43 = vadd.f32 %v1171_v44, %v343_v62  ;;  %v334_v33 = vmul.f32 %v1163_v32, %v306_v40 }
 0x15f   :  { %v344_v49 = vmul.f32 %v1163_v32, %v316_v29 }
 0x160   :  { %v382_v27 = vpack.c.bf16 %v371_v43, %v370_v9  ;;  %v335_v54 = vmul.f32 %v1163_v32, %v307_v16  ;;  %v362_v50 = vadd.f32 %v1171_v44, %v334_v33  ;;  %v1264_v32 = vld [vmem:[%s1375_s4] ss:$0 sm:$0xff] }
 0x161   :  { %763 = vmatmul.mubr.msk.bf16.gmra.mrb[16].mxu0 %vm42_vm0, %v377_v48  ;;  %v372_v37 = vadd.f32 %v1171_v44, %v344_v49 }
 0x162   :  { %783 = vmatmul.mubr.msk.bf16.gmra.mrb[12].mxu1 %vm42_vm0, %v382_v27  ;;  %766 = vmatprep.mubr.msk.bf16.mxu0 %vm841_vm1, %v840_v39  ;;  %v363_v26 = vadd.f32 %v1171_v44, %v335_v54 }
 0x163   :  { %786 = vmatprep.mubr.msk.bf16.mxu1 %vm841_vm1, %v840_v39  ;;  %v383_v13 = vpack.c.bf16 %v372_v37, %v372_v37 }
 0x164   :  { %v378_v51 = vpack.c.bf16 %v363_v26, %v362_v50 }
 0x169   :  { %767 = vmatmul.mubr.msk.bf16.gmra.mrb[20].mxu0 %vm42_vm0, %v378_v51 }
 0x16a   :  { %787 = vmatmul.mubr.msk.bf16.gmra.mrb[16].mxu1 %vm42_vm0, %v383_v13 }
 0x214   :  { %v474_v20 = vpop.f32.mrb[0].mxu0 }
 0x215   :  { %v475_v39 = vadd.f32 %v1264_v32, %v474_v20  ;;  %v748_v53 = vpop.f32.mrb[1].mxu0 }
 0x216   :  { %v477_v56 = vpop.f32.mrb[2].mxu0 }
 0x217   :  { %v708_v57 = vpack.c.bf16 %v475_v39, %v475_v39  ;;  %v478_v44 = vadd.f32 %v1264_v32, %v477_v56  ;;  %v749_v58 = vpop.f32.mrb[3].mxu0 }
 0x219   :  { %646 = vst.msk [vmem:[%s1376_s5] sm:$0xf] %vm645_vm2, %v708_v57  ;;  %v709_v59 = vpack.c.bf16 %v478_v44, %v478_v44 }
 0x21b   :  { %647 = vst.msk [vmem:[%s1376_s5 + $0x4] sm:$0xf] %vm645_vm2, %v709_v59 }
 0x21c   :  { %v482_v60 = vpop.f32.mrb[4].mxu0 }
 0x21d   :  { %v522_v61 = vpop.f32.mrb[0].mxu1  ;;  %v483_v47 = vadd.f32 %v1264_v32, %v482_v60  ;;  %v752_v63 = vpop.f32.mrb[5].mxu0 }
 0x21e   :  { %v523_v24 = vadd.f32 %v1264_v32, %v522_v61  ;;  %v772_v2 = vpop.f32.mrb[1].mxu1  ;;  %v485_v55 = vpop.f32.mrb[6].mxu0 }
 0x21f   :  { %v525_v3 = vpop.f32.mrb[2].mxu1  ;;  %v710_v0 = vpack.c.bf16 %v483_v47, %v483_v47  ;;  %v486_v5 = vadd.f32 %v1264_v32, %v485_v55  ;;  %v753_v7 = vpop.f32.mrb[7].mxu0 }
 0x220   :  { %v720_v4 = vpack.c.bf16 %v523_v24, %v523_v24  ;;  %v526_v6 = vadd.f32 %v1264_v32, %v525_v3  ;;  %v773_v52 = vpop.f32.mrb[3].mxu1 }
 0x221   :  { %648 = vst.msk [vmem:[%s1376_s5 + $0x8] sm:$0xf] %vm645_vm2, %v710_v0  ;;  %v711_v17 = vpack.c.bf16 %v486_v5, %v486_v5 }
 0x222   :  { %658 = vst.msk [vmem:[%s1376_s5 + $0x30] sm:$0xf] %vm645_vm2, %v720_v4  ;;  %v721_v28 = vpack.c.bf16 %v526_v6, %v526_v6 }
 0x223   :  { %649 = vst.msk [vmem:[%s1376_s5 + $0xc] sm:$0xf] %vm645_vm2, %v711_v17 }
 0x224   :  { %659 = vst.msk [vmem:[%s1376_s5 + $0x34] sm:$0xf] %vm645_vm2, %v721_v28  ;;  %v490_v42 = vpop.f32.mrb[8].mxu0 }
 0x225   :  { %v530_v8 = vpop.f32.mrb[4].mxu1  ;;  %v491_v21 = vadd.f32 %v1264_v32, %v490_v42  ;;  %v756_v15 = vpop.f32.mrb[9].mxu0 }
 0x226   :  { %v531_v14 = vadd.f32 %v1264_v32, %v530_v8  ;;  %v776_v1 = vpop.f32.mrb[5].mxu1  ;;  %v493_v18 = vpop.f32.mrb[10].mxu0 }
 0x227   :  { %v533_v19 = vpop.f32.mrb[6].mxu1  ;;  %v712_v22 = vpack.c.bf16 %v491_v21, %v491_v21  ;;  %v494_v12 = vadd.f32 %v1264_v32, %v493_v18  ;;  %v757_v11 = vpop.f32.mrb[11].mxu0 }
 0x228   :  { %v722_v23 = vpack.c.bf16 %v531_v14, %v531_v14  ;;  %v534_v30 = vadd.f32 %v1264_v32, %v533_v19  ;;  %v777_v31 = vpop.f32.mrb[7].mxu1 }
 0x229   :  { %650 = vst.msk [vmem:[%s1376_s5 + $0x10] sm:$0xf] %vm645_vm2, %v712_v22  ;;  %v713_v34 = vpack.c.bf16 %v494_v12, %v494_v12 }
 0x22a   :  { %660 = vst.msk [vmem:[%s1376_s5 + $0x38] sm:$0xf] %vm645_vm2, %v722_v23  ;;  %v723_v35 = vpack.c.bf16 %v534_v30, %v534_v30 }
 0x22b   :  { %651 = vst.msk [vmem:[%s1376_s5 + $0x14] sm:$0xf] %vm645_vm2, %v713_v34 }
 0x22c   :  { %661 = vst.msk [vmem:[%s1376_s5 + $0x3c] sm:$0xf] %vm645_vm2, %v723_v35  ;;  %v498_v38 = vpop.f32.mrb[12].mxu0 }
 0x22d   :  { %v538_v10 = vpop.f32.mrb[8].mxu1  ;;  %v499_v25 = vadd.f32 %v1264_v32, %v498_v38  ;;  %v760_v62 = vpop.f32.mrb[13].mxu0 }
 0x22e   :  { %v539_v36 = vadd.f32 %v1264_v32, %v538_v10  ;;  %v780_v46 = vpop.f32.mrb[9].mxu1  ;;  %v501_v29 = vpop.f32.mrb[14].mxu0 }
 0x22f   :  { %v541_v41 = vpop.f32.mrb[10].mxu1  ;;  %v714_v16 = vpack.c.bf16 %v499_v25, %v499_v25  ;;  %v502_v43 = vadd.f32 %v1264_v32, %v501_v29  ;;  %v761_v45 = vpop.f32.mrb[15].mxu0 }
 0x230   :  { %v724_v9 = vpack.c.bf16 %v539_v36, %v539_v36  ;;  %v542_v40 = vadd.f32 %v1264_v32, %v541_v41  ;;  %v781_v27 = vpop.f32.mrb[11].mxu1 }
 0x231   :  { %652 = vst.msk [vmem:[%s1376_s5 + $0x18] sm:$0xf] %vm645_vm2, %v714_v16  ;;  %v715_v48 = vpack.c.bf16 %v502_v43, %v502_v43 }
 0x232   :  { %662 = vst.msk [vmem:[%s1376_s5 + $0x40] sm:$0xf] %vm645_vm2, %v724_v9  ;;  %v725_v54 = vpack.c.bf16 %v542_v40, %v542_v40 }
 0x233   :  { %653 = vst.msk [vmem:[%s1376_s5 + $0x1c] sm:$0xf] %vm645_vm2, %v715_v48 }
 0x234   :  { %663 = vst.msk [vmem:[%s1376_s5 + $0x44] sm:$0xf] %vm645_vm2, %v725_v54  ;;  %v506_v49 = vpop.f32.mrb[16].mxu0 }
 0x235   :  { %v546_v33 = vpop.f32.mrb[12].mxu1  ;;  %v507_v26 = vadd.f32 %v1264_v32, %v506_v49  ;;  %v764_v50 = vpop.f32.mrb[17].mxu0 }
 0x236   :  { %v547_v37 = vadd.f32 %v1264_v32, %v546_v33  ;;  %v784_v51 = vpop.f32.mrb[13].mxu1  ;;  %v509_v13 = vpop.f32.mrb[18].mxu0 }
 0x237   :  { %v549_v20 = vpop.f32.mrb[14].mxu1  ;;  %v716_v39 = vpack.c.bf16 %v507_v26, %v507_v26  ;;  %v510_v56 = vadd.f32 %v1264_v32, %v509_v13  ;;  %v765_v44 = vpop.f32.mrb[19].mxu0 }
 0x238   :  { %v726_v53 = vpack.c.bf16 %v547_v37, %v547_v37  ;;  %v550_v57 = vadd.f32 %v1264_v32, %v549_v20  ;;  %v785_v58 = vpop.f32.mrb[15].mxu1 }
 0x239   :  { %654 = vst.msk [vmem:[%s1376_s5 + $0x20] sm:$0xf] %vm645_vm2, %v716_v39  ;;  %v717_v59 = vpack.c.bf16 %v510_v56, %v510_v56 }
 0x23a   :  { %664 = vst.msk [vmem:[%s1376_s5 + $0x48] sm:$0xf] %vm645_vm2, %v726_v53  ;;  %v727_v60 = vpack.c.bf16 %v550_v57, %v550_v57 }
 0x23b   :  { %655 = vst.msk [vmem:[%s1376_s5 + $0x24] sm:$0xf] %vm645_vm2, %v717_v59 }
 0x23c   :  { %665 = vst.msk [vmem:[%s1376_s5 + $0x4c] sm:$0xf] %vm645_vm2, %v727_v60  ;;  %v514_v61 = vpop.f32.mrb[20].mxu0 }
 0x23d   :  { %v554_v47 = vpop.f32.mrb[16].mxu1  ;;  %v515_v24 = vadd.f32 %v1264_v32, %v514_v61  ;;  %v768_v2 = vpop.f32.mrb[21].mxu0 }
 0x23e   :  { %v555_v63 = vadd.f32 %v1264_v32, %v554_v47  ;;  %v788_v55 = vpop.f32.mrb[17].mxu1  ;;  %v517_v3 = vpop.f32.mrb[22].mxu0 }
 0x23f   :  { %v557_v0 = vpop.f32.mrb[18].mxu1  ;;  %v718_v4 = vpack.c.bf16 %v515_v24, %v515_v24  ;;  %v518_v6 = vadd.f32 %v1264_v32, %v517_v3  ;;  %v769_v7 = vpop.f32.mrb[23].mxu0 }
 0x240   :  { %v728_v5 = vpack.c.bf16 %v555_v63, %v555_v63  ;;  %v789_v52 = vpop.f32.mrb[19].mxu1 }
 0x241   :  { %656 = vst.msk [vmem:[%s1376_s5 + $0x28] sm:$0xf] %vm645_vm2, %v718_v4  ;;  %v719_v17 = vpack.c.bf16 %v518_v6, %v518_v6 }
 0x242   :  { %666 = vst.msk [vmem:[%s1376_s5 + $0x50] sm:$0xf] %vm645_vm2, %v728_v5 }
 0x243   :  { %657 = vst.msk [vmem:[%s1376_s5 + $0x2c] sm:$0xf] %vm645_vm2, %v719_v17 }

</bundles_post_ra>
